<compile_context>
chip_gen: v7x
topology: tpu7x:2x2x1
jax: 0.10.0
libtpu: 0.0.40
codegen_flags: <defaults>
</compile_context>

<pallas_src>
import jax
import jax.numpy as jnp
from jax.experimental import pallas as pl
from jax.experimental.pallas import tpu as pltpu


def _lstm_encoder_kernel(x_ref, params_ref, out_ref):
    """x_ref: (T*B, N) bf16 — time-major-flattened inputs.
       params_ref: (N + H + 8, 4H) f32 —
         rows [0, N)       : W_ih^T   (i/f/o columns pre-scaled by 0.5)
         rows [N, N+H)     : W_hh^T   (i/f/o columns pre-scaled by 0.5)
         row  N+H          : b_ih+b_hh (i/f/o columns pre-scaled by 0.5)
         rows (N+H, N+H+8) : zero padding (keeps segments 8-row aligned)
       out_ref: (B, H) f32 — msg = h[T-1]."""
    B, H = out_ref.shape
    TB, N = x_ref.shape
    T = TB // B  # static Python int at trace time

    # Hoisted single load of all parameters; weights cast once to bf16 MXU operands.
    params = params_ref[...]                              # (N+H+8, 4H) f32
    wih = params[0:N, :].astype(jnp.bfloat16)             # (N, 4H) bf16
    whh = params[N:N + H, :].astype(jnp.bfloat16)         # (H, 4H) bf16
    bias = params[N + H:N + H + 1, :]                     # (1, 4H) f32

    # Batched input projection for ALL timesteps: one MXU matmul + one bias add.
    xproj = jnp.dot(x_ref[...], wih,
                    preferred_element_type=jnp.float32) + bias    # (T*B, 4H) f32

    h = jnp.zeros((B, H), jnp.float32)
    c = jnp.zeros((B, H), jnp.float32)

    # Fully unrolled recurrence (T is a small static constant).  Per step: one
    # small bf16 MXU matmul, ONE tanh over the whole (B, 4H) gates tile (sigmoid
    # lanes recovered via 0.5*tanh(0.5 z)+0.5 thanks to the pre-scaled columns),
    # and tanh(c).  Row slices xproj[t*B:(t+1)*B] are sublane-aligned (B % 8 == 0).
    for t in range(T):
        gates = xproj[t * B:(t + 1) * B, :] + jnp.dot(
            h.astype(jnp.bfloat16), whh, preferred_element_type=jnp.float32)
        th = jnp.tanh(gates)                               # single EUP op on (B, 4H)
        i_g = 0.5 * th[:, 0 * H:1 * H] + 0.5               # sigmoid(z)
        f_g = 0.5 * th[:, 1 * H:2 * H] + 0.5               # sigmoid(z)
        g_g = th[:, 2 * H:3 * H]                           # tanh(z)
        o_g = 0.5 * th[:, 3 * H:4 * H] + 0.5               # sigmoid(z)
        c = f_g * c + i_g * g_g
        h = o_g * jnp.tanh(c)

    out_ref[...] = h.astype(out_ref.dtype)                 # msg = h[-1, :, :]


def encoder_forward(inputs, w_ih, w_hh, b_ih, b_hh):
    """inputs: (T, B, num_symbols) f32.  Weights in PyTorch nn.LSTM layout:
       w_ih (4H, N), w_hh (4H, H), b_ih (4H,), b_hh (4H,).  Returns (B, H) f32."""
    T, B, N = inputs.shape
    H = w_hh.shape[1]
    assert w_ih.shape == (4 * H, N) and w_hh.shape == (4 * H, H)
    # Layout contract: segments of the packed parameter array must start on
    # multiple-of-8 rows; B is padded up to a sublane multiple below.
    assert N % 8 == 0 and H % 8 == 0, "pad num_symbols / enc_dim to multiples of 8"

    x = jnp.asarray(inputs, jnp.float32)
    B_pad = -(-B // 8) * 8
    if B_pad != B:
        x = jnp.pad(x, ((0, 0), (0, B_pad - B), (0, 0)))   # zero-pad batch (sublane)

    # Gate-column scale (PyTorch gate order i, f, g, o): 0.5 on i/f/o, 1.0 on g.
    # Baked into the weights/bias so one in-kernel tanh yields the sigmoid lanes.
    gate_scale = jnp.concatenate(
        [jnp.full((H,), 0.5), jnp.full((H,), 0.5),
         jnp.full((H,), 1.0), jnp.full((H,), 0.5)]).astype(jnp.float32)     # (4H,)

    wih_t = jnp.asarray(w_ih, jnp.float32).T * gate_scale                   # (N, 4H)
    whh_t = jnp.asarray(w_hh, jnp.float32).T * gate_scale                   # (H, 4H)
    bias = ((jnp.asarray(b_ih, jnp.float32) + jnp.asarray(b_hh, jnp.float32))
            * gate_scale).reshape(1, 4 * H)                                 # (1, 4H)

    # Single consolidated parameter input (one DMA); pad to N + H + 8 rows so every
    # segment starts on an 8-row boundary.
    params = jnp.concatenate(
        [wih_t, whh_t, bias, jnp.zeros((7, 4 * H), jnp.float32)], axis=0)   # (N+H+8, 4H)

    # Time-major flatten; bf16 halves the input DMA and feeds the MXU directly.
    x2d = x.reshape(T * B_pad, N).astype(jnp.bfloat16)                      # (T*B, N)

    vmem = pltpu.MemorySpace.VMEM
    out = pl.pallas_call(
        _lstm_encoder_kernel,
        out_shape=jax.ShapeDtypeStruct((B_pad, H), jnp.float32),
        # Gridless: single invocation, whole (tiny) problem resident in VMEM.
        # For large batched use on v7x, add a leading "parallel" batch-chunk grid
        # axis to occupy both TensorCores and keep xproj chunked below VMEM.
        in_specs=[
            pl.BlockSpec(memory_space=vmem),   # x2d     (T*B, N) bf16
            pl.BlockSpec(memory_space=vmem),   # params  (N+H+8, 4H) f32
        ],
        out_specs=pl.BlockSpec(memory_space=vmem),
    )(x2d, params)
    return out[:B]


def _reference_forward(inputs, w_ih, w_hh, b_ih, b_hh):
    """Pure-JAX f32 reference of nn.LSTM forward, returning h[-1]."""
    T, B, N = inputs.shape
    H = w_hh.shape[1]
    bias = b_ih + b_hh

    def step(carry, x_t):
        h_prev, c_prev = carry
        gates = x_t @ w_ih.T + h_prev @ w_hh.T + bias
        i_g = jax.nn.sigmoid(gates[:, 0 * H:1 * H])
        f_g = jax.nn.sigmoid(gates[:, 1 * H:2 * H])
        g_g = jnp.tanh(gates[:, 2 * H:3 * H])
        o_g = jax.nn.sigmoid(gates[:, 3 * H:4 * H])
        c_new = f_g * c_prev + i_g * g_g
        h_new = o_g * jnp.tanh(c_new)
        return (h_new, c_new), h_new

    init = (jnp.zeros((B, H), jnp.float32), jnp.zeros((B, H), jnp.float32))
    (_, _), hs = jax.lax.scan(step, init, inputs)
    return hs[-1]


if __name__ == "__main__":
    # Module hyperparameters (embedding_size is unused by Encoder.forward).
    embedding_size = 16   # unused, kept for fidelity to __init__ signature
    enc_dim = 32
    num_symbols = 32

    T, B = 8, 8           # seq_len, batch

    key = jax.random.PRNGKey(0)
    k_x, k_wih, k_whh, k_bih, k_bhh = jax.random.split(key, 5)

    # Deterministic parameter init, PyTorch-style uniform(-1/sqrt(H), 1/sqrt(H)).
    bound = 1.0 / (enc_dim ** 0.5)
    w_ih = jax.random.uniform(k_wih, (4 * enc_dim, num_symbols), jnp.float32, -bound, bound)
    w_hh = jax.random.uniform(k_whh, (4 * enc_dim, enc_dim), jnp.float32, -bound, bound)
    b_ih = jax.random.uniform(k_bih, (4 * enc_dim,), jnp.float32, -bound, bound)
    b_hh = jax.random.uniform(k_bhh, (4 * enc_dim,), jnp.float32, -bound, bound)

    inputs = jax.random.normal(k_x, (T, B, num_symbols), jnp.float32)

    msg = jax.block_until_ready(encoder_forward(inputs, w_ih, w_hh, b_ih, b_hh))
    ref = jax.block_until_ready(_reference_forward(inputs, w_ih, w_hh, b_ih, b_hh))

    assert msg.shape == (B, enc_dim)
    # Kernel uses bf16 MXU operands (f32 accumulation); tolerance relaxed vs the
    # full-f32 reference per the perf review.
    assert jnp.allclose(msg, ref, atol=6e-2, rtol=6e-2), "mismatch vs reference"

    print("KERNEL_OK")
</pallas_src>

<mosaic_0001>
module attributes {stable_mosaic.version = 11 : i64} {
  func.func @_lstm_encoder_kernel(%arg0: memref<64x32xbf16, #tpu.memory_space<vmem>>, %arg1: memref<72x128xf32, #tpu.memory_space<vmem>>, %arg2: memref<8x32xf32, #tpu.memory_space<vmem>>) attributes {dimension_semantics = [], scalar_prefetch = 0 : i64, scratch_operands = 0 : i64, tpu.core_type = #tpu.core_type<tc>} {
    %c0 = arith.constant 0 : index
    %c0_0 = arith.constant 0 : index
    %0 = vector.load %arg1[%c0, %c0_0] : memref<72x128xf32, #tpu.memory_space<vmem>>, vector<72x128xf32>
    %1 = vector.extract_strided_slice %0 {offsets = [0, 0], sizes = [32, 128], strides = [1, 1]} : vector<72x128xf32> to vector<32x128xf32>
    %2 = arith.truncf %1 : vector<32x128xf32> to vector<32x128xbf16>
    %3 = vector.extract_strided_slice %0 {offsets = [32, 0], sizes = [32, 128], strides = [1, 1]} : vector<72x128xf32> to vector<32x128xf32>
    %4 = arith.truncf %3 : vector<32x128xf32> to vector<32x128xbf16>
    %5 = vector.extract_strided_slice %0 {offsets = [64, 0], sizes = [1, 128], strides = [1, 1]} : vector<72x128xf32> to vector<1x128xf32>
    %c0_1 = arith.constant 0 : index
    %c0_2 = arith.constant 0 : index
    %6 = vector.load %arg0[%c0_1, %c0_2] : memref<64x32xbf16, #tpu.memory_space<vmem>>, vector<64x32xbf16>
    %cst = arith.constant dense<0.000000e+00> : vector<64x128xf32>
    %7 = tpu.matmul %6, %2, %cst {dimension_numbers = #tpu.dot_dimension_numbers<[1], [0], [0], [1], [0, 0, 1, 1], [], []>} : vector<64x32xbf16>, vector<32x128xbf16>, vector<64x128xf32> -> vector<64x128xf32>
    %8 = vector.broadcast %5 : vector<1x128xf32> to vector<64x128xf32>
    %9 = arith.addf %7, %8 : vector<64x128xf32>
    %cst_3 = arith.constant 0.000000e+00 : f32
    %10 = vector.broadcast %cst_3 : f32 to vector<8x32xf32>
    %cst_4 = arith.constant 0.000000e+00 : f32
    %11 = vector.broadcast %cst_4 : f32 to vector<8x32xf32>
    %12 = vector.extract_strided_slice %9 {offsets = [0, 0], sizes = [8, 128], strides = [1, 1]} : vector<64x128xf32> to vector<8x128xf32>
    %13 = arith.truncf %10 : vector<8x32xf32> to vector<8x32xbf16>
    %cst_5 = arith.constant dense<0.000000e+00> : vector<8x128xf32>
    %14 = tpu.matmul %13, %4, %cst_5 {dimension_numbers = #tpu.dot_dimension_numbers<[1], [0], [0], [1], [0, 0, 1, 1], [], []>} : vector<8x32xbf16>, vector<32x128xbf16>, vector<8x128xf32> -> vector<8x128xf32>
    %15 = arith.addf %12, %14 : vector<8x128xf32>
    %16 = math.tanh %15 : vector<8x128xf32>
    %17 = vector.extract_strided_slice %16 {offsets = [0, 0], sizes = [8, 32], strides = [1, 1]} : vector<8x128xf32> to vector<8x32xf32>
    %cst_6 = arith.constant 5.000000e-01 : f32
    %18 = vector.broadcast %cst_6 : f32 to vector<8x32xf32>
    %19 = arith.mulf %18, %17 : vector<8x32xf32>
    %cst_7 = arith.constant 5.000000e-01 : f32
    %20 = vector.broadcast %cst_7 : f32 to vector<8x32xf32>
    %21 = arith.addf %19, %20 : vector<8x32xf32>
    %22 = vector.extract_strided_slice %16 {offsets = [0, 32], sizes = [8, 32], strides = [1, 1]} : vector<8x128xf32> to vector<8x32xf32>
    %cst_8 = arith.constant 5.000000e-01 : f32
    %23 = vector.broadcast %cst_8 : f32 to vector<8x32xf32>
    %24 = arith.mulf %23, %22 : vector<8x32xf32>
    %cst_9 = arith.constant 5.000000e-01 : f32
    %25 = vector.broadcast %cst_9 : f32 to vector<8x32xf32>
    %26 = arith.addf %24, %25 : vector<8x32xf32>
    %27 = vector.extract_strided_slice %16 {offsets = [0, 64], sizes = [8, 32], strides = [1, 1]} : vector<8x128xf32> to vector<8x32xf32>
    %28 = vector.extract_strided_slice %16 {offsets = [0, 96], sizes = [8, 32], strides = [1, 1]} : vector<8x128xf32> to vector<8x32xf32>
    %cst_10 = arith.constant 5.000000e-01 : f32
    %29 = vector.broadcast %cst_10 : f32 to vector<8x32xf32>
    %30 = arith.mulf %29, %28 : vector<8x32xf32>
    %cst_11 = arith.constant 5.000000e-01 : f32
    %31 = vector.broadcast %cst_11 : f32 to vector<8x32xf32>
    %32 = arith.addf %30, %31 : vector<8x32xf32>
    %33 = arith.mulf %26, %11 : vector<8x32xf32>
    %34 = arith.mulf %21, %27 : vector<8x32xf32>
    %35 = arith.addf %33, %34 : vector<8x32xf32>
    %36 = math.tanh %35 : vector<8x32xf32>
    %37 = arith.mulf %32, %36 : vector<8x32xf32>
    %38 = vector.extract_strided_slice %9 {offsets = [8, 0], sizes = [8, 128], strides = [1, 1]} : vector<64x128xf32> to vector<8x128xf32>
    %39 = arith.truncf %37 : vector<8x32xf32> to vector<8x32xbf16>
    %cst_12 = arith.constant dense<0.000000e+00> : vector<8x128xf32>
    %40 = tpu.matmul %39, %4, %cst_12 {dimension_numbers = #tpu.dot_dimension_numbers<[1], [0], [0], [1], [0, 0, 1, 1], [], []>} : vector<8x32xbf16>, vector<32x128xbf16>, vector<8x128xf32> -> vector<8x128xf32>
    %41 = arith.addf %38, %40 : vector<8x128xf32>
    %42 = math.tanh %41 : vector<8x128xf32>
    %43 = vector.extract_strided_slice %42 {offsets = [0, 0], sizes = [8, 32], strides = [1, 1]} : vector<8x128xf32> to vector<8x32xf32>
    %cst_13 = arith.constant 5.000000e-01 : f32
    %44 = vector.broadcast %cst_13 : f32 to vector<8x32xf32>
    %45 = arith.mulf %44, %43 : vector<8x32xf32>
    %cst_14 = arith.constant 5.000000e-01 : f32
    %46 = vector.broadcast %cst_14 : f32 to vector<8x32xf32>
    %47 = arith.addf %45, %46 : vector<8x32xf32>
    %48 = vector.extract_strided_slice %42 {offsets = [0, 32], sizes = [8, 32], strides = [1, 1]} : vector<8x128xf32> to vector<8x32xf32>
    %cst_15 = arith.constant 5.000000e-01 : f32
    %49 = vector.broadcast %cst_15 : f32 to vector<8x32xf32>
    %50 = arith.mulf %49, %48 : vector<8x32xf32>
    %cst_16 = arith.constant 5.000000e-01 : f32
    %51 = vector.broadcast %cst_16 : f32 to vector<8x32xf32>
    %52 = arith.addf %50, %51 : vector<8x32xf32>
    %53 = vector.extract_strided_slice %42 {offsets = [0, 64], sizes = [8, 32], strides = [1, 1]} : vector<8x128xf32> to vector<8x32xf32>
    %54 = vector.extract_strided_slice %42 {offsets = [0, 96], sizes = [8, 32], strides = [1, 1]} : vector<8x128xf32> to vector<8x32xf32>
    %cst_17 = arith.constant 5.000000e-01 : f32
    %55 = vector.broadcast %cst_17 : f32 to vector<8x32xf32>
    %56 = arith.mulf %55, %54 : vector<8x32xf32>
    %cst_18 = arith.constant 5.000000e-01 : f32
    %57 = vector.broadcast %cst_18 : f32 to vector<8x32xf32>
    %58 = arith.addf %56, %57 : vector<8x32xf32>
    %59 = arith.mulf %52, %35 : vector<8x32xf32>
    %60 = arith.mulf %47, %53 : vector<8x32xf32>
    %61 = arith.addf %59, %60 : vector<8x32xf32>
    %62 = math.tanh %61 : vector<8x32xf32>
    %63 = arith.mulf %58, %62 : vector<8x32xf32>
    %64 = vector.extract_strided_slice %9 {offsets = [16, 0], sizes = [8, 128], strides = [1, 1]} : vector<64x128xf32> to vector<8x128xf32>
    %65 = arith.truncf %63 : vector<8x32xf32> to vector<8x32xbf16>
    %cst_19 = arith.constant dense<0.000000e+00> : vector<8x128xf32>
    %66 = tpu.matmul %65, %4, %cst_19 {dimension_numbers = #tpu.dot_dimension_numbers<[1], [0], [0], [1], [0, 0, 1, 1], [], []>} : vector<8x32xbf16>, vector<32x128xbf16>, vector<8x128xf32> -> vector<8x128xf32>
    %67 = arith.addf %64, %66 : vector<8x128xf32>
    %68 = math.tanh %67 : vector<8x128xf32>
    %69 = vector.extract_strided_slice %68 {offsets = [0, 0], sizes = [8, 32], strides = [1, 1]} : vector<8x128xf32> to vector<8x32xf32>
    %cst_20 = arith.constant 5.000000e-01 : f32
    %70 = vector.broadcast %cst_20 : f32 to vector<8x32xf32>
    %71 = arith.mulf %70, %69 : vector<8x32xf32>
    %cst_21 = arith.constant 5.000000e-01 : f32
    %72 = vector.broadcast %cst_21 : f32 to vector<8x32xf32>
    %73 = arith.addf %71, %72 : vector<8x32xf32>
    %74 = vector.extract_strided_slice %68 {offsets = [0, 32], sizes = [8, 32], strides = [1, 1]} : vector<8x128xf32> to vector<8x32xf32>
    %cst_22 = arith.constant 5.000000e-01 : f32
    %75 = vector.broadcast %cst_22 : f32 to vector<8x32xf32>
    %76 = arith.mulf %75, %74 : vector<8x32xf32>
    %cst_23 = arith.constant 5.000000e-01 : f32
    %77 = vector.broadcast %cst_23 : f32 to vector<8x32xf32>
    %78 = arith.addf %76, %77 : vector<8x32xf32>
    %79 = vector.extract_strided_slice %68 {offsets = [0, 64], sizes = [8, 32], strides = [1, 1]} : vector<8x128xf32> to vector<8x32xf32>
    %80 = vector.extract_strided_slice %68 {offsets = [0, 96], sizes = [8, 32], strides = [1, 1]} : vector<8x128xf32> to vector<8x32xf32>
    %cst_24 = arith.constant 5.000000e-01 : f32
    %81 = vector.broadcast %cst_24 : f32 to vector<8x32xf32>
    %82 = arith.mulf %81, %80 : vector<8x32xf32>
    %cst_25 = arith.constant 5.000000e-01 : f32
    %83 = vector.broadcast %cst_25 : f32 to vector<8x32xf32>
    %84 = arith.addf %82, %83 : vector<8x32xf32>
    %85 = arith.mulf %78, %61 : vector<8x32xf32>
    %86 = arith.mulf %73, %79 : vector<8x32xf32>
    %87 = arith.addf %85, %86 : vector<8x32xf32>
    %88 = math.tanh %87 : vector<8x32xf32>
    %89 = arith.mulf %84, %88 : vector<8x32xf32>
    %90 = vector.extract_strided_slice %9 {offsets = [24, 0], sizes = [8, 128], strides = [1, 1]} : vector<64x128xf32> to vector<8x128xf32>
    %91 = arith.truncf %89 : vector<8x32xf32> to vector<8x32xbf16>
    %cst_26 = arith.constant dense<0.000000e+00> : vector<8x128xf32>
    %92 = tpu.matmul %91, %4, %cst_26 {dimension_numbers = #tpu.dot_dimension_numbers<[1], [0], [0], [1], [0, 0, 1, 1], [], []>} : vector<8x32xbf16>, vector<32x128xbf16>, vector<8x128xf32> -> vector<8x128xf32>
    %93 = arith.addf %90, %92 : vector<8x128xf32>
    %94 = math.tanh %93 : vector<8x128xf32>
    %95 = vector.extract_strided_slice %94 {offsets = [0, 0], sizes = [8, 32], strides = [1, 1]} : vector<8x128xf32> to vector<8x32xf32>
    %cst_27 = arith.constant 5.000000e-01 : f32
    %96 = vector.broadcast %cst_27 : f32 to vector<8x32xf32>
    %97 = arith.mulf %96, %95 : vector<8x32xf32>
    %cst_28 = arith.constant 5.000000e-01 : f32
    %98 = vector.broadcast %cst_28 : f32 to vector<8x32xf32>
    %99 = arith.addf %97, %98 : vector<8x32xf32>
    %100 = vector.extract_strided_slice %94 {offsets = [0, 32], sizes = [8, 32], strides = [1, 1]} : vector<8x128xf32> to vector<8x32xf32>
    %cst_29 = arith.constant 5.000000e-01 : f32
    %101 = vector.broadcast %cst_29 : f32 to vector<8x32xf32>
    %102 = arith.mulf %101, %100 : vector<8x32xf32>
    %cst_30 = arith.constant 5.000000e-01 : f32
    %103 = vector.broadcast %cst_30 : f32 to vector<8x32xf32>
    %104 = arith.addf %102, %103 : vector<8x32xf32>
    %105 = vector.extract_strided_slice %94 {offsets = [0, 64], sizes = [8, 32], strides = [1, 1]} : vector<8x128xf32> to vector<8x32xf32>
    %106 = vector.extract_strided_slice %94 {offsets = [0, 96], sizes = [8, 32], strides = [1, 1]} : vector<8x128xf32> to vector<8x32xf32>
    %cst_31 = arith.constant 5.000000e-01 : f32
    %107 = vector.broadcast %cst_31 : f32 to vector<8x32xf32>
    %108 = arith.mulf %107, %106 : vector<8x32xf32>
    %cst_32 = arith.constant 5.000000e-01 : f32
    %109 = vector.broadcast %cst_32 : f32 to vector<8x32xf32>
    %110 = arith.addf %108, %109 : vector<8x32xf32>
    %111 = arith.mulf %104, %87 : vector<8x32xf32>
    %112 = arith.mulf %99, %105 : vector<8x32xf32>
    %113 = arith.addf %111, %112 : vector<8x32xf32>
    %114 = math.tanh %113 : vector<8x32xf32>
    %115 = arith.mulf %110, %114 : vector<8x32xf32>
    %116 = vector.extract_strided_slice %9 {offsets = [32, 0], sizes = [8, 128], strides = [1, 1]} : vector<64x128xf32> to vector<8x128xf32>
    %117 = arith.truncf %115 : vector<8x32xf32> to vector<8x32xbf16>
    %cst_33 = arith.constant dense<0.000000e+00> : vector<8x128xf32>
    %118 = tpu.matmul %117, %4, %cst_33 {dimension_numbers = #tpu.dot_dimension_numbers<[1], [0], [0], [1], [0, 0, 1, 1], [], []>} : vector<8x32xbf16>, vector<32x128xbf16>, vector<8x128xf32> -> vector<8x128xf32>
    %119 = arith.addf %116, %118 : vector<8x128xf32>
    %120 = math.tanh %119 : vector<8x128xf32>
    %121 = vector.extract_strided_slice %120 {offsets = [0, 0], sizes = [8, 32], strides = [1, 1]} : vector<8x128xf32> to vector<8x32xf32>
    %cst_34 = arith.constant 5.000000e-01 : f32
    %122 = vector.broadcast %cst_34 : f32 to vector<8x32xf32>
    %123 = arith.mulf %122, %121 : vector<8x32xf32>
    %cst_35 = arith.constant 5.000000e-01 : f32
    %124 = vector.broadcast %cst_35 : f32 to vector<8x32xf32>
    %125 = arith.addf %123, %124 : vector<8x32xf32>
    %126 = vector.extract_strided_slice %120 {offsets = [0, 32], sizes = [8, 32], strides = [1, 1]} : vector<8x128xf32> to vector<8x32xf32>
    %cst_36 = arith.constant 5.000000e-01 : f32
    %127 = vector.broadcast %cst_36 : f32 to vector<8x32xf32>
    %128 = arith.mulf %127, %126 : vector<8x32xf32>
    %cst_37 = arith.constant 5.000000e-01 : f32
    %129 = vector.broadcast %cst_37 : f32 to vector<8x32xf32>
    %130 = arith.addf %128, %129 : vector<8x32xf32>
    %131 = vector.extract_strided_slice %120 {offsets = [0, 64], sizes = [8, 32], strides = [1, 1]} : vector<8x128xf32> to vector<8x32xf32>
    %132 = vector.extract_strided_slice %120 {offsets = [0, 96], sizes = [8, 32], strides = [1, 1]} : vector<8x128xf32> to vector<8x32xf32>
    %cst_38 = arith.constant 5.000000e-01 : f32
    %133 = vector.broadcast %cst_38 : f32 to vector<8x32xf32>
    %134 = arith.mulf %133, %132 : vector<8x32xf32>
    %cst_39 = arith.constant 5.000000e-01 : f32
    %135 = vector.broadcast %cst_39 : f32 to vector<8x32xf32>
    %136 = arith.addf %134, %135 : vector<8x32xf32>
    %137 = arith.mulf %130, %113 : vector<8x32xf32>
    %138 = arith.mulf %125, %131 : vector<8x32xf32>
    %139 = arith.addf %137, %138 : vector<8x32xf32>
    %140 = math.tanh %139 : vector<8x32xf32>
    %141 = arith.mulf %136, %140 : vector<8x32xf32>
    %142 = vector.extract_strided_slice %9 {offsets = [40, 0], sizes = [8, 128], strides = [1, 1]} : vector<64x128xf32> to vector<8x128xf32>
    %143 = arith.truncf %141 : vector<8x32xf32> to vector<8x32xbf16>
    %cst_40 = arith.constant dense<0.000000e+00> : vector<8x128xf32>
    %144 = tpu.matmul %143, %4, %cst_40 {dimension_numbers = #tpu.dot_dimension_numbers<[1], [0], [0], [1], [0, 0, 1, 1], [], []>} : vector<8x32xbf16>, vector<32x128xbf16>, vector<8x128xf32> -> vector<8x128xf32>
    %145 = arith.addf %142, %144 : vector<8x128xf32>
    %146 = math.tanh %145 : vector<8x128xf32>
    %147 = vector.extract_strided_slice %146 {offsets = [0, 0], sizes = [8, 32], strides = [1, 1]} : vector<8x128xf32> to vector<8x32xf32>
    %cst_41 = arith.constant 5.000000e-01 : f32
    %148 = vector.broadcast %cst_41 : f32 to vector<8x32xf32>
    %149 = arith.mulf %148, %147 : vector<8x32xf32>
    %cst_42 = arith.constant 5.000000e-01 : f32
    %150 = vector.broadcast %cst_42 : f32 to vector<8x32xf32>
    %151 = arith.addf %149, %150 : vector<8x32xf32>
    %152 = vector.extract_strided_slice %146 {offsets = [0, 32], sizes = [8, 32], strides = [1, 1]} : vector<8x128xf32> to vector<8x32xf32>
    %cst_43 = arith.constant 5.000000e-01 : f32
    %153 = vector.broadcast %cst_43 : f32 to vector<8x32xf32>
    %154 = arith.mulf %153, %152 : vector<8x32xf32>
    %cst_44 = arith.constant 5.000000e-01 : f32
    %155 = vector.broadcast %cst_44 : f32 to vector<8x32xf32>
    %156 = arith.addf %154, %155 : vector<8x32xf32>
    %157 = vector.extract_strided_slice %146 {offsets = [0, 64], sizes = [8, 32], strides = [1, 1]} : vector<8x128xf32> to vector<8x32xf32>
    %158 = vector.extract_strided_slice %146 {offsets = [0, 96], sizes = [8, 32], strides = [1, 1]} : vector<8x128xf32> to vector<8x32xf32>
    %cst_45 = arith.constant 5.000000e-01 : f32
    %159 = vector.broadcast %cst_45 : f32 to vector<8x32xf32>
    %160 = arith.mulf %159, %158 : vector<8x32xf32>
    %cst_46 = arith.constant 5.000000e-01 : f32
    %161 = vector.broadcast %cst_46 : f32 to vector<8x32xf32>
    %162 = arith.addf %160, %161 : vector<8x32xf32>
    %163 = arith.mulf %156, %139 : vector<8x32xf32>
    %164 = arith.mulf %151, %157 : vector<8x32xf32>
    %165 = arith.addf %163, %164 : vector<8x32xf32>
    %166 = math.tanh %165 : vector<8x32xf32>
    %167 = arith.mulf %162, %166 : vector<8x32xf32>
    %168 = vector.extract_strided_slice %9 {offsets = [48, 0], sizes = [8, 128], strides = [1, 1]} : vector<64x128xf32> to vector<8x128xf32>
    %169 = arith.truncf %167 : vector<8x32xf32> to vector<8x32xbf16>
    %cst_47 = arith.constant dense<0.000000e+00> : vector<8x128xf32>
    %170 = tpu.matmul %169, %4, %cst_47 {dimension_numbers = #tpu.dot_dimension_numbers<[1], [0], [0], [1], [0, 0, 1, 1], [], []>} : vector<8x32xbf16>, vector<32x128xbf16>, vector<8x128xf32> -> vector<8x128xf32>
    %171 = arith.addf %168, %170 : vector<8x128xf32>
    %172 = math.tanh %171 : vector<8x128xf32>
    %173 = vector.extract_strided_slice %172 {offsets = [0, 0], sizes = [8, 32], strides = [1, 1]} : vector<8x128xf32> to vector<8x32xf32>
    %cst_48 = arith.constant 5.000000e-01 : f32
    %174 = vector.broadcast %cst_48 : f32 to vector<8x32xf32>
    %175 = arith.mulf %174, %173 : vector<8x32xf32>
    %cst_49 = arith.constant 5.000000e-01 : f32
    %176 = vector.broadcast %cst_49 : f32 to vector<8x32xf32>
    %177 = arith.addf %175, %176 : vector<8x32xf32>
    %178 = vector.extract_strided_slice %172 {offsets = [0, 32], sizes = [8, 32], strides = [1, 1]} : vector<8x128xf32> to vector<8x32xf32>
    %cst_50 = arith.constant 5.000000e-01 : f32
    %179 = vector.broadcast %cst_50 : f32 to vector<8x32xf32>
    %180 = arith.mulf %179, %178 : vector<8x32xf32>
    %cst_51 = arith.constant 5.000000e-01 : f32
    %181 = vector.broadcast %cst_51 : f32 to vector<8x32xf32>
    %182 = arith.addf %180, %181 : vector<8x32xf32>
    %183 = vector.extract_strided_slice %172 {offsets = [0, 64], sizes = [8, 32], strides = [1, 1]} : vector<8x128xf32> to vector<8x32xf32>
    %184 = vector.extract_strided_slice %172 {offsets = [0, 96], sizes = [8, 32], strides = [1, 1]} : vector<8x128xf32> to vector<8x32xf32>
    %cst_52 = arith.constant 5.000000e-01 : f32
    %185 = vector.broadcast %cst_52 : f32 to vector<8x32xf32>
    %186 = arith.mulf %185, %184 : vector<8x32xf32>
    %cst_53 = arith.constant 5.000000e-01 : f32
    %187 = vector.broadcast %cst_53 : f32 to vector<8x32xf32>
    %188 = arith.addf %186, %187 : vector<8x32xf32>
    %189 = arith.mulf %182, %165 : vector<8x32xf32>
    %190 = arith.mulf %177, %183 : vector<8x32xf32>
    %191 = arith.addf %189, %190 : vector<8x32xf32>
    %192 = math.tanh %191 : vector<8x32xf32>
    %193 = arith.mulf %188, %192 : vector<8x32xf32>
    %194 = vector.extract_strided_slice %9 {offsets = [56, 0], sizes = [8, 128], strides = [1, 1]} : vector<64x128xf32> to vector<8x128xf32>
    %195 = arith.truncf %193 : vector<8x32xf32> to vector<8x32xbf16>
    %cst_54 = arith.constant dense<0.000000e+00> : vector<8x128xf32>
    %196 = tpu.matmul %195, %4, %cst_54 {dimension_numbers = #tpu.dot_dimension_numbers<[1], [0], [0], [1], [0, 0, 1, 1], [], []>} : vector<8x32xbf16>, vector<32x128xbf16>, vector<8x128xf32> -> vector<8x128xf32>
    %197 = arith.addf %194, %196 : vector<8x128xf32>
    %198 = math.tanh %197 : vector<8x128xf32>
    %199 = vector.extract_strided_slice %198 {offsets = [0, 0], sizes = [8, 32], strides = [1, 1]} : vector<8x128xf32> to vector<8x32xf32>
    %cst_55 = arith.constant 5.000000e-01 : f32
    %200 = vector.broadcast %cst_55 : f32 to vector<8x32xf32>
    %201 = arith.mulf %200, %199 : vector<8x32xf32>
    %cst_56 = arith.constant 5.000000e-01 : f32
    %202 = vector.broadcast %cst_56 : f32 to vector<8x32xf32>
    %203 = arith.addf %201, %202 : vector<8x32xf32>
    %204 = vector.extract_strided_slice %198 {offsets = [0, 32], sizes = [8, 32], strides = [1, 1]} : vector<8x128xf32> to vector<8x32xf32>
    %cst_57 = arith.constant 5.000000e-01 : f32
    %205 = vector.broadcast %cst_57 : f32 to vector<8x32xf32>
    %206 = arith.mulf %205, %204 : vector<8x32xf32>
    %cst_58 = arith.constant 5.000000e-01 : f32
    %207 = vector.broadcast %cst_58 : f32 to vector<8x32xf32>
    %208 = arith.addf %206, %207 : vector<8x32xf32>
    %209 = vector.extract_strided_slice %198 {offsets = [0, 64], sizes = [8, 32], strides = [1, 1]} : vector<8x128xf32> to vector<8x32xf32>
    %210 = vector.extract_strided_slice %198 {offsets = [0, 96], sizes = [8, 32], strides = [1, 1]} : vector<8x128xf32> to vector<8x32xf32>
    %cst_59 = arith.constant 5.000000e-01 : f32
    %211 = vector.broadcast %cst_59 : f32 to vector<8x32xf32>
    %212 = arith.mulf %211, %210 : vector<8x32xf32>
    %cst_60 = arith.constant 5.000000e-01 : f32
    %213 = vector.broadcast %cst_60 : f32 to vector<8x32xf32>
    %214 = arith.addf %212, %213 : vector<8x32xf32>
    %215 = arith.mulf %208, %191 : vector<8x32xf32>
    %216 = arith.mulf %203, %209 : vector<8x32xf32>
    %217 = arith.addf %215, %216 : vector<8x32xf32>
    %218 = math.tanh %217 : vector<8x32xf32>
    %219 = arith.mulf %214, %218 : vector<8x32xf32>
    %c0_61 = arith.constant 0 : index
    %c0_62 = arith.constant 0 : index
    %220 = vector.load %arg2[%c0_61, %c0_62] : memref<8x32xf32, #tpu.memory_space<vmem>>, vector<8x32xf32>
    tpu.vector_store %arg2[%c0_61, %c0_62], %219 {strides = array<i32>} : memref<8x32xf32, #tpu.memory_space<vmem>>, vector<8x32xf32>,
    return
  }
}

</mosaic_0001>

<bundles_post_ra>
// kernel: tpu_custom_call.1
= control target key start
LH: loop header
LB: loop body
LE: loop exit
PB: predicated region body
PF: predicated region fallthrough
CT: control target
= control target key end

     0   :  { %7 = vsyncpa [#allocation3], 0  ;;  %s1108_s0 = inlined_call_operand.vmem [shape: bf16[64,32], index: 0, kind: input, shape index: {}]   ;;  %s1109_s1 = inlined_call_operand.hbm [shape: f32[72,128], index: 1, kind: input, shape index: {}]   ;;  %s1110_s2 = inlined_call_operand.hbm [shape: f32[8,32], index: 2, kind: output, shape index: {}]  }
   0x1   :  { %8 = vsyncpa [#allocation4], 0  ;;  %s924_s9 = smov [#allocation2]   ;;  %s876_s13 = scalar_lea.hbm %s1109_s1, 1152 }
   0x2   :  { %s16_s10 = sshll.u32 %s924_s9, 4  ;;  %p877_p0 = scmp.ne.s32.totalorder %s1109_s1, %s876_s13  ;;  %s17_s10 = int_to_ptr.vmem [resolvable:$true] %s16_s10 }
   0x3   :  { %p880_p1 = scmp.lt.u32.totalorder %s876_s13, %s1109_s1 }
   0x5   :  { %p882_p2 = pnand %p880_p1, %p877_p0 }
   0x7   :  { %885 = shalt.err (!%p882_p2)
}
   0x8   :  { %s886_s18 = scalar_lea.vmem %s17_s10, 1152  ;;  %p891_p4 = scmp.lt.s32.totalorder %s17_s10, %s17_s10 }
   0x9   :  { %p887_p3 = scmp.ne.s32.totalorder %s17_s10, %s886_s18  ;;  %p892_p5 = scmp.lt.s32.totalorder %s886_s18, %s886_s18 }
   0xb   :  { %p893_p6 = por %p892_p5, %p891_p4 }
   0xd   :  { %p894_p7 = pnand %p893_p6, %p887_p3 }
   0xf   :  { %897 = shalt.err (!%p894_p7)
}
  0x10   :  { %s925_s19 = smov 128   ;;  %s926_s20 = smov 8  }
  0x11   :  { %22 = dma.hbm_to_vmem [thread:$0]  %s1109_s1, 1152, %s17_s10, [#allocation3], %s925_s19, %s925_s19, %s926_s20  }
  0x12   :  { %920 = dma.done.wait [#allocation3], 1152  }
  0x13   :  { %921 = vsyncadd [#allocation3], 4294966144  ;;  %v927_v0 = vmov 0.0   ;;  %vm928_vm0 = vmmov 0   ;;  %v27_v1 = vld [vmem:[#allocation2] sm:$0xff]  ;;  %v28_v2 = vld [vmem:[#allocation2 + $0x8] sm:$0xff]  ;;  %v48_v16 = vlaneseq }
  0x14   :  { %767 = vmatprep.subr.bf16.mxu1 %v927_v0  ;;  %771 = vmatprep.mubr.msk.bf16.mxu1 %vm928_vm0, %v927_v0  ;;  %v31_v3 = vld [vmem:[#allocation2 + $0x20] sm:$0xff]  ;;  %v36_v4 = vpack.c.bf16 %v28_v2, %v27_v1  ;;  %v32_v5 = vld [vmem:[#allocation2 + $0x28] sm:$0xff]  ;;  %v29_v6 = vld [vmem:[#allocation2 + $0x10] sm:$0xff]  ;;  %vm72_vm1 = vcmask 261120   ;;  %v929_v15 = vmov 0   ;;  %s930_s26 = smov 64  }
  0x15   :  { %v30_v7 = vld [vmem:[#allocation2 + $0x18] sm:$0xff]  ;;  %v963_v8 = vpack.c.bf16 %v32_v5, %v31_v3  ;;  %v33_v10 = vld [vmem:[#allocation2 + $0x30] sm:$0xff]  ;;  %v840_v12 = vld [vmem:[%s1108_s0] sm:$0xff]   ;;  %v49_v17 = vshrl.u32 %v48_v16, 7  ;;  %s931_s27 = smov 32  }
  0x16   :  { %v37_v9 = vpack.c.bf16 %v30_v7, %v29_v6  ;;  %v34_v11 = vld [vmem:[#allocation2 + $0x38] sm:$0xff]  ;;  %755 = vmatprep.subr.bf16.mxu0 %v36_v4  ;;  %759 = vmatprep.mubr.msk.bf16.mxu0 %vm72_vm1, %v840_v12  ;;  %v841_v14 = vld [vmem:[%s1108_s0 + $0x8] sm:$0xff]   ;;  %v35_v19 = vld [vmem:[#allocation2 + $0x40] sm:$0xff] }
  0x17   :  { %756 = vmatpush3.bf16.msra.mxu0 %v36_v4  ;;  %768 = vmatpush3.bf16.msra.mxu1 %v963_v8  ;;  %v969_v13 = vpack.c.bf16 %v34_v11, %v33_v10  ;;  %v50_v18 = vsub.s32 0, %v49_v17  ;;  %v842_v58 = vld [vmem:[%s1108_s0 + $0x10] sm:$0xff]   ;;  %v843_v59 = vld [vmem:[%s1108_s0 + $0x18] sm:$0xff]   ;;  %s932_s0 = smov [#allocation5]  }
  0x18   :  { %757 = vmatprep.subr.bf16.mxu0 %v37_v9  ;;  %769 = vmatprep.subr.bf16.mxu1 %v927_v0  ;;  %s701_s4 = sshll.u32 %s932_s0, 4  ;;  %s702_s4 = int_to_ptr.vmem [resolvable:$true] %s701_s4 }
  0x19   :  { %v990_v20 = vrot.slane %v35_v19, %v50_v18  ;;  %s898_s5 = scalar_lea.vmem %s702_s4, 128  ;;  %p903_p9 = scmp.lt.s32.totalorder %s702_s4, %s702_s4 }
  0x1a   :  { %p899_p8 = scmp.ne.s32.totalorder %s702_s4, %s898_s5  ;;  %p904_p10 = scmp.lt.s32.totalorder %s898_s5, %s898_s5 }
  0x1b   :  { %758 = vmatpush3.bf16.msra.mxu0 %v37_v9  ;;  %770 = vmatpush3.bf16.msra.mxu1 %v969_v13 }
  0x1c   :  { %775 = vmatprep.subr.bf16.mxu1 %v927_v0  ;;  %783 = vmatprep.subr.bf16.mxu0 %v927_v0  ;;  %p905_p11 = por %p904_p10, %p903_p9 }
  0x1e   :  { %760 = vmatmul.mubr.msk.bf16.vlgmr.msra.gmra.mrb[0].mxu0 %vm72_vm1, %v841_v14  ;;  %772 = vmatmul.mubr.bf16.vlgmr.msra.gmra.mrb[0].mxu1 %v929_v15  ;;  %p906_p12 = pnand %p905_p11, %p899_p8 }
  0x1f   :  { %776 = vmatpush3.bf16.msra.mxu1 %v963_v8  ;;  %779 = vmatprep.mubr.msk.bf16.mxu1 %vm928_vm0, %v927_v0 }
  0x20   :  { %777 = vmatprep.subr.bf16.mxu1 %v927_v0  ;;  %784 = vmatpush3.bf16.msra.mxu0 %v963_v8 }
  0x21   :  { %785 = vmatprep.subr.bf16.mxu0 %v927_v0  ;;  %763 = vmatprep.mubr.msk.bf16.mxu0 %vm72_vm1, %v842_v58 }
  0x23   :  { %778 = vmatpush3.bf16.msra.mxu1 %v969_v13 }
  0x24   :  { %786 = vmatpush3.bf16.msra.mxu0 %v969_v13  ;;  %791 = vmatprep.subr.bf16.mxu1 %v927_v0 }
  0x25   :  { %799 = vmatprep.subr.bf16.mxu0 %v927_v0 }
  0x26   :  { %764 = vmatmul.mubr.msk.bf16.gmra.mrb[4].mxu0 %vm72_vm1, %v843_v59 }
  0x27   :  { %787 = vmatprep.mubr.msk.bf16.mxu0 %vm928_vm0, %v927_v0 }
  0xf1   :  { %v992_v21 = vpop.f32.mrb[0].mxu0  ;;  %v187_v22 = vpop.f32.mrb[0].mxu1 }
  0xf2   :  { %v119_v23 = vpop.f32.mrb[1].mxu0  ;;  %v773_v24 = vpop.f32.mrb[1].mxu1  ;;  %v128_v6 = vadd.f32 %v992_v21, %v990_v20 }
  0xf3   :  { %v120_v25 = vadd.f32 %v119_v23, %v990_v20  ;;  %v995_v26 = vpop.f32.mrb[2].mxu0  ;;  %v190_v27 = vpop.f32.mrb[2].mxu1 }
  0xf4   :  { %v122_v28 = vpop.f32.mrb[3].mxu0  ;;  %v774_v29 = vpop.f32.mrb[3].mxu1 }
  0xf5   :  { %v193_v30 = vadd.f32 %v187_v22, %v120_v25  ;;  %v123_v44 = vadd.f32 %v122_v28, %v990_v20  ;;  %v131_v29 = vadd.f32 %v995_v26, %v990_v20 }
  0xf7   :  { %844 = vtanh.f32 %v193_v30 }
  0xf9   :  { %v1023_v1 = vpop.f32.mrb[4].mxu0 }
  0xfa   :  { %v1025_v2 = vpop.f32.mrb[5].mxu0 }
  0xfb   :  { %v1027_v3 = vpop.f32.mrb[6].mxu0 }
  0xfc   :  { %v1029_v4 = vpop.f32.mrb[7].mxu0 }
 0x101   :  { %v845_v31 = vpop.eup %844 }
 0x102   :  { %199 = vrot.lane.b32.xlu0 %v845_v31, %s930_s26  ;;  %v195_v32 = vmul.f32 0.5, %v845_v31 }
 0x104   :  { %v196_v33 = vadd.f32 0.5, %v195_v32 }
 0x106   :  { %v197_v36 = vmul.f32 0.0, %v196_v33 }
 0x174   :  { %v200_v34 = vpop.permute.xlu0 %199 }
 0x175   :  { %v202_v35 = vmul.f32 %v200_v34, %v196_v33 }
 0x177   :  { %204 = vrot.lane.b32.xlu0 %v202_v35, %s931_s27 }
 0x1e9   :  { %v205_v37 = vpop.permute.xlu0 %204 }
 0x1ea   :  { %v207_v38 = vadd.f32 %v205_v37, %v197_v36 }
 0x1ec   :  { %846 = vtanh.f32 %v207_v38 }
 0x1f6   :  { %v847_v39 = vpop.eup %846 }
 0x1f7   :  { %210 = vrot.lane.b32.xlu1 %v847_v39, %s930_s26 }
 0x269   :  { %v211_v40 = vpop.permute.xlu1 %210 }
 0x26a   :  { %v213_v41 = vmul.f32 %v211_v40, %v196_v33 }
 0x26c   :  { %v214_v42 = vpack.c.bf16 %v213_v41, %v213_v41 }
 0x26e   :  { %216 = vrot.lane.b32.xlu1 %v214_v42, %s931_s27 }
 0x2e0   :  { %v217_v43 = vpop.permute.xlu1 %216 }
 0x2e1   :  { %780 = vmatmul.mubr.msk.bf16.vlgmr.msra.gmra.mrb[4].mxu1 %vm72_vm1, %v217_v43 }
 0x2e2   :  { %792 = vmatpush3.bf16.msra.mxu1 %v963_v8  ;;  %795 = vmatprep.mubr.msk.bf16.mxu1 %vm928_vm0, %v927_v0 }
 0x2e3   :  { %793 = vmatprep.subr.bf16.mxu1 %v927_v0 }
 0x2e6   :  { %794 = vmatpush3.bf16.msra.mxu1 %v969_v13 }
 0x2e7   :  { %807 = vmatprep.subr.bf16.mxu1 %v927_v0 }
 0x3b4   :  { %v255_v45 = vpop.f32.mrb[4].mxu1 }
 0x3b5   :  { %v261_v46 = vadd.f32 %v255_v45, %v123_v44  ;;  %v781_v47 = vpop.f32.mrb[5].mxu1 }
 0x3b6   :  { %v258_v48 = vpop.f32.mrb[6].mxu1  ;;  %v136_v47 = vadd.f32 %v1025_v2, %v990_v20 }
 0x3b7   :  { %848 = vtanh.f32 %v261_v46  ;;  %v782_v49 = vpop.f32.mrb[7].mxu1 }
 0x3c1   :  { %v849_v50 = vpop.eup %848 }
 0x3c2   :  { %267 = vrot.lane.b32.xlu0 %v849_v50, %s930_s26  ;;  %v263_v51 = vmul.f32 0.5, %v849_v50 }
 0x3c4   :  { %v264_v52 = vadd.f32 0.5, %v263_v51 }
 0x3c6   :  { %v265_v55 = vmul.f32 %v264_v52, %v207_v38 }
 0x434   :  { %v268_v53 = vpop.permute.xlu0 %267 }
 0x435   :  { %v270_v54 = vmul.f32 %v268_v53, %v264_v52 }
 0x437   :  { %272 = vrot.lane.b32.xlu1 %v270_v54, %s931_s27 }
 0x4a9   :  { %v273_v56 = vpop.permute.xlu1 %272 }
 0x4aa   :  { %v275_v57 = vadd.f32 %v273_v56, %v265_v55 }
 0x4ac   :  { %850 = vtanh.f32 %v275_v57 }
 0x4b6   :  { %v851_v60 = vpop.eup %850 }
 0x4b7   :  { %278 = vrot.lane.b32.xlu0 %v851_v60, %s930_s26 }
 0x529   :  { %v279_v61 = vpop.permute.xlu0 %278 }
 0x52a   :  { %v281_v62 = vmul.f32 %v279_v61, %v264_v52 }
 0x52c   :  { %v282_v63 = vpack.c.bf16 %v281_v62, %v281_v62 }
 0x52e   :  { %284 = vrot.lane.b32.xlu1 %v282_v63, %s931_s27 }
 0x5a0   :  { %v285_v5 = vpop.permute.xlu1 %284 }
 0x5a1   :  { %788 = vmatmul.mubr.msk.bf16.vlgmr.msra.gmra.mrb[8].mxu0 %vm72_vm1, %v285_v5 }
 0x5a2   :  { %800 = vmatpush3.bf16.msra.mxu0 %v963_v8  ;;  %803 = vmatprep.mubr.msk.bf16.mxu0 %vm928_vm0, %v927_v0 }
 0x5a3   :  { %801 = vmatprep.subr.bf16.mxu0 %v927_v0 }
 0x5a6   :  { %802 = vmatpush3.bf16.msra.mxu0 %v969_v13 }
 0x5a7   :  { %815 = vmatprep.subr.bf16.mxu0 %v927_v0 }
 0x674   :  { %v323_v7 = vpop.f32.mrb[8].mxu0 }
 0x675   :  { %v329_v9 = vadd.f32 %v323_v7, %v128_v6  ;;  %v789_v10 = vpop.f32.mrb[9].mxu0  ;;  %v139_v6 = vadd.f32 %v1029_v4, %v990_v20 }
 0x676   :  { %v326_v11 = vpop.f32.mrb[10].mxu0 }
 0x677   :  { %852 = vtanh.f32 %v329_v9  ;;  %v790_v12 = vpop.f32.mrb[11].mxu0 }
 0x681   :  { %v853_v14 = vpop.eup %852 }
 0x682   :  { %335 = vrot.lane.b32.xlu0 %v853_v14, %s930_s26  ;;  %v331_v15 = vmul.f32 0.5, %v853_v14 }
 0x684   :  { %v332_v16 = vadd.f32 0.5, %v331_v15 }
 0x686   :  { %v333_v19 = vmul.f32 %v332_v16, %v275_v57 }
 0x6f4   :  { %v336_v17 = vpop.permute.xlu0 %335 }
 0x6f5   :  { %v338_v18 = vmul.f32 %v336_v17, %v332_v16 }
 0x6f7   :  { %340 = vrot.lane.b32.xlu1 %v338_v18, %s931_s27 }
 0x769   :  { %v341_v22 = vpop.permute.xlu1 %340 }
 0x76a   :  { %v343_v23 = vadd.f32 %v341_v22, %v333_v19 }
 0x76c   :  { %854 = vtanh.f32 %v343_v23 }
 0x776   :  { %v855_v21 = vpop.eup %854 }
 0x777   :  { %346 = vrot.lane.b32.xlu0 %v855_v21, %s930_s26 }
 0x7e9   :  { %v347_v24 = vpop.permute.xlu0 %346 }
 0x7ea   :  { %v349_v25 = vmul.f32 %v347_v24, %v332_v16  ;;  %v144_v24 = vadd.f32 %v1023_v1, %v990_v20 }
 0x7ec   :  { %v350_v27 = vpack.c.bf16 %v349_v25, %v349_v25 }
 0x7ee   :  { %352 = vrot.lane.b32.xlu1 %v350_v27, %s931_s27 }
 0x860   :  { %v353_v28 = vpop.permute.xlu1 %352 }
 0x861   :  { %796 = vmatmul.mubr.msk.bf16.vlgmr.msra.gmra.mrb[8].mxu1 %vm72_vm1, %v353_v28 }
 0x862   :  { %808 = vmatpush3.bf16.msra.mxu1 %v963_v8  ;;  %811 = vmatprep.mubr.msk.bf16.mxu1 %vm928_vm0, %v927_v0 }
 0x863   :  { %809 = vmatprep.subr.bf16.mxu1 %v927_v0 }
 0x866   :  { %810 = vmatpush3.bf16.msra.mxu1 %v969_v13 }
 0x867   :  { %823 = vmatprep.subr.bf16.mxu1 %v927_v0 }
 0x934   :  { %v391_v30 = vpop.f32.mrb[8].mxu1 }
 0x935   :  { %v397_v31 = vadd.f32 %v391_v30, %v131_v29  ;;  %v797_v32 = vpop.f32.mrb[9].mxu1 }
 0x936   :  { %v394_v33 = vpop.f32.mrb[10].mxu1 }
 0x937   :  { %856 = vtanh.f32 %v397_v31  ;;  %v798_v34 = vpop.f32.mrb[11].mxu1 }
 0x941   :  { %v857_v35 = vpop.eup %856 }
 0x942   :  { %403 = vrot.lane.b32.xlu0 %v857_v35, %s930_s26  ;;  %v399_v36 = vmul.f32 0.5, %v857_v35 }
 0x944   :  { %v400_v37 = vadd.f32 0.5, %v399_v36 }
 0x946   :  { %v401_v40 = vmul.f32 %v400_v37, %v343_v23 }
 0x9b4   :  { %v404_v38 = vpop.permute.xlu0 %403 }
 0x9b5   :  { %v406_v39 = vmul.f32 %v404_v38, %v400_v37 }
 0x9b7   :  { %408 = vrot.lane.b32.xlu1 %v406_v39, %s931_s27 }
 0xa29   :  { %v409_v41 = vpop.permute.xlu1 %408 }
 0xa2a   :  { %v411_v42 = vadd.f32 %v409_v41, %v401_v40 }
 0xa2c   :  { %858 = vtanh.f32 %v411_v42 }
 0xa36   :  { %v859_v26 = vpop.eup %858 }
 0xa37   :  { %414 = vrot.lane.b32.xlu0 %v859_v26, %s930_s26  ;;  %v147_v26 = vadd.f32 %v1027_v3, %v990_v20 }
 0xaa9   :  { %v415_v43 = vpop.permute.xlu0 %414 }
 0xaaa   :  { %v417_v44 = vmul.f32 %v415_v43, %v400_v37 }
 0xaac   :  { %v418_v45 = vpack.c.bf16 %v417_v44, %v417_v44 }
 0xaae   :  { %420 = vrot.lane.b32.xlu1 %v418_v45, %s931_s27 }
 0xb20   :  { %v421_v46 = vpop.permute.xlu1 %420 }
 0xb21   :  { %804 = vmatmul.mubr.msk.bf16.vlgmr.msra.gmra.mrb[12].mxu0 %vm72_vm1, %v421_v46 }
 0xb22   :  { %816 = vmatpush3.bf16.msra.mxu0 %v963_v8  ;;  %819 = vmatprep.mubr.msk.bf16.mxu0 %vm928_vm0, %v927_v0 }
 0xb23   :  { %817 = vmatprep.subr.bf16.mxu0 %v927_v0 }
 0xb26   :  { %818 = vmatpush3.bf16.msra.mxu0 %v969_v13 }
 0xbf4   :  { %v459_v48 = vpop.f32.mrb[12].mxu0 }
 0xbf5   :  { %v465_v49 = vadd.f32 %v459_v48, %v136_v47  ;;  %v805_v50 = vpop.f32.mrb[13].mxu0 }
 0xbf6   :  { %v462_v51 = vpop.f32.mrb[14].mxu0 }
 0xbf7   :  { %860 = vtanh.f32 %v465_v49  ;;  %v806_v52 = vpop.f32.mrb[15].mxu0 }
 0xc01   :  { %v861_v53 = vpop.eup %860 }
 0xc02   :  { %471 = vrot.lane.b32.xlu0 %v861_v53, %s930_s26  ;;  %v467_v54 = vmul.f32 0.5, %v861_v53 }
 0xc04   :  { %v468_v55 = vadd.f32 0.5, %v467_v54 }
 0xc06   :  { %v469_v58 = vmul.f32 %v468_v55, %v411_v42 }
 0xc74   :  { %v472_v56 = vpop.permute.xlu0 %471 }
 0xc75   :  { %v474_v57 = vmul.f32 %v472_v56, %v468_v55 }
 0xc77   :  { %476 = vrot.lane.b32.xlu1 %v474_v57, %s931_s27 }
 0xce9   :  { %v477_v59 = vpop.permute.xlu1 %476 }
 0xcea   :  { %v479_v60 = vadd.f32 %v477_v59, %v469_v58 }
 0xcec   :  { %862 = vtanh.f32 %v479_v60 }
 0xcf6   :  { %v863_v61 = vpop.eup %862 }
 0xcf7   :  { %482 = vrot.lane.b32.xlu0 %v863_v61, %s930_s26 }
 0xd69   :  { %v483_v62 = vpop.permute.xlu0 %482 }
 0xd6a   :  { %v485_v63 = vmul.f32 %v483_v62, %v468_v55 }
 0xd6c   :  { %v486_v2 = vpack.c.bf16 %v485_v63, %v485_v63 }
 0xd6e   :  { %488 = vrot.lane.b32.xlu1 %v486_v2, %s931_s27 }
 0xde0   :  { %v489_v5 = vpop.permute.xlu1 %488 }
 0xde1   :  { %812 = vmatmul.mubr.msk.bf16.vlgmr.msra.gmra.mrb[12].mxu1 %vm72_vm1, %v489_v5 }
 0xde2   :  { %824 = vmatpush3.bf16.msra.mxu1 %v963_v8  ;;  %827 = vmatprep.mubr.msk.bf16.mxu1 %vm928_vm0, %v927_v0 }
 0xde3   :  { %825 = vmatprep.subr.bf16.mxu1 %v927_v0 }
 0xde6   :  { %826 = vmatpush3.bf16.msra.mxu1 %v969_v13 }
 0xeb4   :  { %v527_v7 = vpop.f32.mrb[12].mxu1 }
 0xeb5   :  { %v533_v9 = vadd.f32 %v527_v7, %v139_v6  ;;  %v813_v10 = vpop.f32.mrb[13].mxu1 }
 0xeb6   :  { %v530_v11 = vpop.f32.mrb[14].mxu1 }
 0xeb7   :  { %864 = vtanh.f32 %v533_v9  ;;  %v814_v12 = vpop.f32.mrb[15].mxu1 }
 0xec1   :  { %v865_v14 = vpop.eup %864 }
 0xec2   :  { %539 = vrot.lane.b32.xlu0 %v865_v14, %s930_s26  ;;  %v535_v8 = vmul.f32 0.5, %v865_v14 }
 0xec4   :  { %v536_v15 = vadd.f32 0.5, %v535_v8 }
 0xec6   :  { %v537_v0 = vmul.f32 %v536_v15, %v479_v60 }
 0xf34   :  { %v540_v16 = vpop.permute.xlu0 %539 }
 0xf35   :  { %v542_v17 = vmul.f32 %v540_v16, %v536_v15 }
 0xf37   :  { %544 = vrot.lane.b32.xlu1 %v542_v17, %s931_s27 }
 0xfa9   :  { %v545_v13 = vpop.permute.xlu1 %544 }
 0xfaa   :  { %v547_v18 = vadd.f32 %v545_v13, %v537_v0 }
 0xfac   :  { %866 = vtanh.f32 %v547_v18 }
 0xfb6   :  { %v867_v4 = vpop.eup %866 }
 0xfb7   :  { %550 = vrot.lane.b32.xlu0 %v867_v4, %s930_s26 }
0x1029   :  { %v551_v19 = vpop.permute.xlu0 %550 }
0x102a   :  { %v553_v22 = vmul.f32 %v551_v19, %v536_v15 }
0x102c   :  { %v554_v23 = vpack.c.bf16 %v553_v22, %v553_v22 }
0x102e   :  { %556 = vrot.lane.b32.xlu1 %v554_v23, %s931_s27 }
0x10a0   :  { %v557_v21 = vpop.permute.xlu1 %556 }
0x10a1   :  { %820 = vmatmul.mubr.msk.bf16.vlgmr.msra.gmra.mrb[16].mxu0 %vm72_vm1, %v557_v21 }
0x1174   :  { %v595_v25 = vpop.f32.mrb[16].mxu0 }
0x1175   :  { %v601_v27 = vadd.f32 %v595_v25, %v144_v24  ;;  %v821_v28 = vpop.f32.mrb[17].mxu0 }
0x1176   :  { %v598_v29 = vpop.f32.mrb[18].mxu0 }
0x1177   :  { %868 = vtanh.f32 %v601_v27  ;;  %v822_v30 = vpop.f32.mrb[19].mxu0 }
0x1181   :  { %v869_v31 = vpop.eup %868 }
0x1182   :  { %607 = vrot.lane.b32.xlu0 %v869_v31, %s930_s26  ;;  %v603_v32 = vmul.f32 0.5, %v869_v31 }
0x1184   :  { %v604_v33 = vadd.f32 0.5, %v603_v32 }
0x1186   :  { %v605_v36 = vmul.f32 %v604_v33, %v547_v18 }
0x11f4   :  { %v608_v34 = vpop.permute.xlu0 %607 }
0x11f5   :  { %v610_v35 = vmul.f32 %v608_v34, %v604_v33 }
0x11f7   :  { %612 = vrot.lane.b32.xlu1 %v610_v35, %s931_s27 }
0x1269   :  { %v613_v37 = vpop.permute.xlu1 %612 }
0x126a   :  { %v615_v38 = vadd.f32 %v613_v37, %v605_v36 }
0x126c   :  { %870 = vtanh.f32 %v615_v38 }
0x1276   :  { %v871_v1 = vpop.eup %870 }
0x1277   :  { %618 = vrot.lane.b32.xlu0 %v871_v1, %s930_s26 }
0x12e9   :  { %v619_v39 = vpop.permute.xlu0 %618 }
0x12ea   :  { %v621_v40 = vmul.f32 %v619_v39, %v604_v33 }
0x12ec   :  { %v622_v41 = vpack.c.bf16 %v621_v40, %v621_v40 }
0x12ee   :  { %624 = vrot.lane.b32.xlu1 %v622_v41, %s931_s27 }
0x1360   :  { %v625_v42 = vpop.permute.xlu1 %624 }
0x1361   :  { %828 = vmatmul.mubr.msk.bf16.vlgmr.msra.gmra.mrb[16].mxu1 %vm72_vm1, %v625_v42 }
0x1434   :  { %v663_v43 = vpop.f32.mrb[16].mxu1 }
0x1435   :  { %v669_v44 = vadd.f32 %v663_v43, %v147_v26  ;;  %v829_v45 = vpop.f32.mrb[17].mxu1 }
0x1436   :  { %v666_v46 = vpop.f32.mrb[18].mxu1 }
0x1437   :  { %872 = vtanh.f32 %v669_v44  ;;  %v830_v47 = vpop.f32.mrb[19].mxu1 }
0x1441   :  { %v873_v48 = vpop.eup %872 }
0x1442   :  { %675 = vrot.lane.b32.xlu0 %v873_v48, %s930_s26  ;;  %v671_v49 = vmul.f32 0.5, %v873_v48 }
0x1444   :  { %v672_v50 = vadd.f32 0.5, %v671_v49 }
0x1446   :  { %v673_v53 = vmul.f32 %v672_v50, %v615_v38 }
0x14b4   :  { %v676_v51 = vpop.permute.xlu0 %675 }
0x14b5   :  { %v678_v52 = vmul.f32 %v676_v51, %v672_v50 }
0x14b7   :  { %680 = vrot.lane.b32.xlu1 %v678_v52, %s931_s27 }
0x1529   :  { %v681_v54 = vpop.permute.xlu1 %680 }
0x152a   :  { %v683_v55 = vadd.f32 %v681_v54, %v673_v53 }
0x152c   :  { %874 = vtanh.f32 %v683_v55 }
0x1536   :  { %v875_v20 = vpop.eup %874 }
0x1537   :  { %686 = vrot.lane.b32.xlu0 %v875_v20, %s930_s26 }
0x15a9   :  { %v687_v3 = vpop.permute.xlu0 %686 }
0x15aa   :  { %v689_v56 = vmul.f32 %v687_v3, %v672_v50 }
0x15ac   :  { %691 = vrot.lane.b32.xlu1 %v689_v56, %s931_s27 }
0x161e   :  { %v692_v57 = vpop.permute.xlu1 %691 }
0x161f   :  { %694 = vst.msk [vmem:[#allocation5] sm:$0xff] %vm72_vm1, %v692_v57 }
0x1620   :  { %909 = shalt.err (!%p906_p12)
}
0x1621   :  { %s910_s8 = scalar_lea.hbm %s1110_s2, 128 }
0x1622   :  { %p911_p13 = scmp.ne.s32.totalorder %s1110_s2, %s910_s8  ;;  %p914_p0 = scmp.lt.u32.totalorder %s910_s8, %s1110_s2 }
0x1624   :  { %p916_p1 = pnand %p914_p0, %p911_p13 }
0x1626   :  { %919 = shalt.err (!%p916_p1)
}
0x1627   :  { %704 = dma.vmem_to_hbm [thread:$0]  %s702_s4, 128, %s1110_s2, [#allocation4]  }
0x1628   :  { %922 = dma.done.wait [#allocation4], 128  }
0x1629   :  { %923 = vsyncadd [#allocation4], 4294967168 }
0x162a   :  { %708 = vsyncpa [#allocation3], 1 }
0x162b   :  { %709 = vsyncpa [#allocation4], 1 }

</bundles_post_ra>
